<compile_context>
chip_gen: v7x
topology: tpu7x:2x2x1
jax: 0.10.0
libtpu: 0.0.40
codegen_flags: <defaults>
</compile_context>

<pallas_src>
import jax
import jax.numpy as jnp
from jax.experimental import pallas as pl
from jax.experimental.pallas import tpu as pltpu

_LANE = 128


def _prior_net_kernel(xT_ref, w1_ref, b1_ref, w2_ref, b2_ref, mu_ref, lv_ref):
    # Layer 1 (transposed space): h^T = W1 @ x^T on the MXU, f32 accumulation.
    h = jnp.dot(w1_ref[...], xT_ref[...], preferred_element_type=jnp.float32)
    h = jnp.maximum(h + b1_ref[...], 0.0)          # (H, TB) + (H, 1), f32 VPU
    h = h.astype(w2_ref.dtype)                     # single downcast before layer 2

    # Layer 2 (fused mu|logvar rows): y^T = W2 @ h^T -> (2L, TB), f32 acc.
    y = jnp.dot(w2_ref[...], h, preferred_element_type=jnp.float32) + b2_ref[...]

    L = mu_ref.shape[0]
    mu_ref[...] = y[:L].astype(mu_ref.dtype)       # lane-dense (L, TB) stores
    lv_ref[...] = y[L:].astype(lv_ref.dtype)


def _select_batch_tile(B, target_tb):
    """Lane-aligned batch tile + padded batch extent.

    Batch lives on the lane axis, so the tile must be a multiple of 128 (or
    cover the whole padded batch).  When more than one grid step is needed,
    prefer an even step count so "parallel" balances v7x's two TensorCores.
    """
    target_tb = max(_LANE, (int(target_tb) // _LANE) * _LANE)
    b_pad = ((B + _LANE - 1) // _LANE) * _LANE
    if b_pad <= target_tb:
        return b_pad, b_pad                        # single step covers everything
    best = None
    for cand in range(target_tb, _LANE - 1, -_LANE):
        steps = -(-b_pad // cand)
        padded = steps * cand
        key = (steps % 2, padded - B, -cand)       # even steps, least padding, big tile
        if best is None or key < best[0]:
            best = (key, cand, padded)
    return best[1], best[2]


def _vmem_bytes_estimate(Din, H, two_L, tb, compute_dtype, out_dtype):
    c = jnp.dtype(compute_dtype).itemsize
    o = jnp.dtype(out_dtype).itemsize
    x_tile = Din * tb * c
    out_tiles = two_L * tb * o
    weights = (H * Din + two_L * H) * c + (H + two_L) * 4
    # Worst case: pipeline double-buffers everything (incl. invariant weights).
    return 2 * (x_tile + out_tiles + weights)


def private_prior_network(x, params, *, tb=2048, compute_dtype=jnp.bfloat16):
    """x: (..., input_dim). Returns (mu, logvar), each (..., latent_dim).

    Weights use the native PyTorch nn.Linear layout:
      w1: (hidden, input), b1: (hidden,), w2: (2*latent, hidden), b2: (2*latent,)
    """
    w1, b1, w2, b2 = params["w1"], params["b1"], params["w2"], params["b2"]

    orig_dtype = x.dtype
    lead = x.shape[:-1]
    Din = x.shape[-1]
    x2 = x.reshape(-1, Din)
    B = x2.shape[0]

    H, din_w = w1.shape
    assert din_w == Din, f"w1 must be (hidden, input)=(H, {Din}), got {w1.shape}"
    two_L, h_w = w2.shape
    assert h_w == H and two_L % 2 == 0, f"w2 must be (2*latent, {H}), got {w2.shape}"
    assert b1.size == H and b2.size == two_L, "bias sizes do not match weights"
    L = two_L // 2

    # Biases stay f32 (added on the f32 MXU accumulator); weights/x stream in
    # compute_dtype (bf16 by default: MXU-native, halves HBM + resident VMEM).
    w1c = w1.astype(compute_dtype)                 # (H, Din)
    w2c = w2.astype(compute_dtype)                 # (2L, H)
    b1c = b1.reshape(H, 1).astype(jnp.float32)
    b2c = b2.reshape(two_L, 1).astype(jnp.float32)

    tb_sel, Bp = _select_batch_tile(B, tb)
    grid = (Bp // tb_sel,)

    # Batch onto the lane axis; pad ragged batches up to the tiled extent
    # (padded columns are sliced off below — pure layout plumbing).
    xT = x2.astype(compute_dtype).T                # (Din, B)
    if Bp != B:
        xT = jnp.pad(xT, ((0, 0), (0, Bp - B)))

    const = lambda shape: pl.BlockSpec(shape, lambda i: (0,) * len(shape))

    cdt_size = jnp.dtype(compute_dtype).itemsize
    out_size = jnp.dtype(orig_dtype).itemsize
    cost = pl.CostEstimate(
        flops=2 * Bp * (Din * H + H * two_L),
        transcendentals=0,
        bytes_accessed=int(
            Din * Bp * cdt_size                       # streamed x^T
            + (H * Din + two_L * H) * cdt_size        # resident weights
            + (H + two_L) * 4                         # f32 biases
            + two_L * Bp * out_size                   # mu^T + logvar^T
        ),
    )

    compiler_kwargs = dict(dimension_semantics=("parallel",))
    vmem_est = _vmem_bytes_estimate(Din, H, two_L, tb_sel, compute_dtype, orig_dtype)
    if vmem_est > 12 * 2**20:
        # Stay explicit once we approach the strictest default scoped VMEM
        # (v5e 16 MiB); cap at v7x's 64 MiB physical per-TC budget.
        compiler_kwargs["vmem_limit_bytes"] = int(min(vmem_est * 1.5, 64 * 2**20))

    mu_T, lv_T = pl.pallas_call(
        _prior_net_kernel,
        out_shape=(
            jax.ShapeDtypeStruct((L, Bp), orig_dtype),
            jax.ShapeDtypeStruct((L, Bp), orig_dtype),
        ),
        grid_spec=pltpu.PrefetchScalarGridSpec(
            num_scalar_prefetch=0,
            grid=grid,
            in_specs=[
                pl.BlockSpec((Din, tb_sel), lambda i: (0, i)),  # streamed x^T tiles
                const((H, Din)),                                # W1 (VMEM-resident)
                const((H, 1)),                                  # b1 (f32)
                const((two_L, H)),                              # W2 fused mu|logvar
                const((two_L, 1)),                              # b2 (f32)
            ],
            out_specs=[
                pl.BlockSpec((L, tb_sel), lambda i: (0, i)),    # mu^T, lane-dense
                pl.BlockSpec((L, tb_sel), lambda i: (0, i)),    # logvar^T, lane-dense
            ],
        ),
        compiler_params=pltpu.CompilerParams(**compiler_kwargs),
        cost_estimate=cost,
    )(xT, w1c, b1c, w2c, b2c)

    mu = mu_T[:, :B].T.reshape(*lead, L)
    logvar = lv_T[:, :B].T.reshape(*lead, L)
    return mu, logvar


def init_params(key, input_dim, hidden_dim, latent_dim, dtype=jnp.float32):
    """Deterministic synthetic init, native PyTorch nn.Linear layout (out, in)."""
    k1, k2, k3, k4 = jax.random.split(key, 4)
    s1 = input_dim ** -0.5
    s2 = hidden_dim ** -0.5
    return {
        "w1": jax.random.uniform(k1, (hidden_dim, input_dim), dtype, -s1, s1),
        "b1": jax.random.uniform(k2, (hidden_dim,), dtype, -s1, s1),
        "w2": jax.random.uniform(k3, (2 * latent_dim, hidden_dim), dtype, -s2, s2),
        "b2": jax.random.uniform(k4, (2 * latent_dim,), dtype, -s2, s2),
    }


def _reference(x, params, compute_dtype=jnp.float32):
    """Pure-JAX reference mirroring the kernel's casting policy."""
    cdt = compute_dtype
    w1 = params["w1"].astype(cdt)
    w2 = params["w2"].astype(cdt)
    b1 = params["b1"].reshape(1, -1).astype(jnp.float32)
    b2 = params["b2"].reshape(1, -1).astype(jnp.float32)
    h = jnp.maximum(
        jnp.dot(x.astype(cdt), w1.T, preferred_element_type=jnp.float32) + b1, 0.0)
    out = jnp.dot(h.astype(cdt), w2.T, preferred_element_type=jnp.float32) + b2
    L = out.shape[-1] // 2
    return out[:, :L].astype(x.dtype), out[:, L:].astype(x.dtype)


if __name__ == "__main__":
    input_dim, hidden_dim, latent_dim = 16, 32, 8
    key = jax.random.PRNGKey(0)
    kx, kp = jax.random.split(key)
    params = init_params(kp, input_dim, hidden_dim, latent_dim)

    # Test 1: f32 compute, B=512 with tb=128 -> 4 lane-dense grid steps
    # (even step count exercises the v7x-friendly megacore split).
    B1 = 512
    x1 = jax.random.normal(kx, (B1, input_dim), dtype=jnp.float32)
    mu, lv = private_prior_network(x1, params, tb=128, compute_dtype=jnp.float32)
    jax.block_until_ready((mu, lv))
    mu_r, lv_r = _reference(x1, params, jnp.float32)
    assert mu.shape == (B1, latent_dim) and lv.shape == (B1, latent_dim)
    assert jnp.allclose(mu, mu_r, atol=1e-5, rtol=1e-5), "mu mismatch (f32 path)"
    assert jnp.allclose(lv, lv_r, atol=1e-5, rtol=1e-5), "logvar mismatch (f32 path)"

    # Test 2: default bf16 streaming path with a ragged batch (exercises the
    # lane-padding + slicing path).
    B2 = 300
    x2 = jax.random.normal(jax.random.PRNGKey(0), (B2, input_dim), dtype=jnp.float32)
    mu2, lv2 = private_prior_network(x2, params)          # bf16 weights/activations
    jax.block_until_ready((mu2, lv2))
    mu2_r, lv2_r = _reference(x2, params, jnp.bfloat16)
    assert mu2.shape == (B2, latent_dim) and lv2.shape == (B2, latent_dim)
    assert jnp.allclose(mu2, mu2_r, atol=3e-2, rtol=3e-2), "mu mismatch (bf16 path)"
    assert jnp.allclose(lv2, lv2_r, atol=3e-2, rtol=3e-2), "logvar mismatch (bf16 path)"

    print("KERNEL_OK")
</pallas_src>

<mosaic_0001>
module attributes {stable_mosaic.version = 11 : i64} {
  func.func @_prior_net_kernel(%arg0: i32, %arg1: memref<16x128xf32, #tpu.memory_space<vmem>>, %arg2: memref<32x16xf32, #tpu.memory_space<vmem>>, %arg3: memref<32x1xf32, #tpu.memory_space<vmem>>, %arg4: memref<16x32xf32, #tpu.memory_space<vmem>>, %arg5: memref<16x1xf32, #tpu.memory_space<vmem>>, %arg6: memref<8x128xf32, #tpu.memory_space<vmem>>, %arg7: memref<8x128xf32, #tpu.memory_space<vmem>>) attributes {dimension_semantics = [#tpu.dimension_semantics<parallel>], iteration_bounds = array<i64: 4>, scalar_prefetch = 0 : i64, scratch_operands = 0 : i64, tpu.core_type = #tpu.core_type<tc>, window_params = [{transform_indices = @transform_0, window_bounds = array<i64: 16, 128>}, {pipeline_mode = #tpu.pipeline_mode<synchronous>, transform_indices = @transform_1, window_bounds = array<i64: 32, 16>}, {pipeline_mode = #tpu.pipeline_mode<synchronous>, transform_indices = @transform_2, window_bounds = array<i64: 32, 1>}, {pipeline_mode = #tpu.pipeline_mode<synchronous>, transform_indices = @transform_3, window_bounds = array<i64: 16, 32>}, {pipeline_mode = #tpu.pipeline_mode<synchronous>, transform_indices = @transform_4, window_bounds = array<i64: 16, 1>}, {transform_indices = @transform_5, window_bounds = array<i64: 8, 128>}, {transform_indices = @transform_6, window_bounds = array<i64: 8, 128>}]} {
    %c0 = arith.constant 0 : index
    %c0_0 = arith.constant 0 : index
    %0 = vector.load %arg2[%c0, %c0_0] : memref<32x16xf32, #tpu.memory_space<vmem>>, vector<32x16xf32>
    %c0_1 = arith.constant 0 : index
    %c0_2 = arith.constant 0 : index
    %1 = vector.load %arg1[%c0_1, %c0_2] : memref<16x128xf32, #tpu.memory_space<vmem>>, vector<16x128xf32>
    %cst = arith.constant dense<0.000000e+00> : vector<32x128xf32>
    %2 = tpu.matmul %0, %1, %cst {dimension_numbers = #tpu.dot_dimension_numbers<[1], [0], [0], [1], [0, 0, 1, 1], [], []>} : vector<32x16xf32>, vector<16x128xf32>, vector<32x128xf32> -> vector<32x128xf32>
    %c0_3 = arith.constant 0 : index
    %c0_4 = arith.constant 0 : index
    %3 = vector.load %arg3[%c0_3, %c0_4] : memref<32x1xf32, #tpu.memory_space<vmem>>, vector<32x1xf32>
    %4 = vector.broadcast %3 : vector<32x1xf32> to vector<32x128xf32>
    %5 = arith.addf %2, %4 : vector<32x128xf32>
    %cst_5 = arith.constant 0.000000e+00 : f32
    %6 = vector.broadcast %cst_5 : f32 to vector<32x128xf32>
    %7 = arith.maximumf %5, %6 : vector<32x128xf32>
    %c0_6 = arith.constant 0 : index
    %c0_7 = arith.constant 0 : index
    %8 = vector.load %arg4[%c0_6, %c0_7] : memref<16x32xf32, #tpu.memory_space<vmem>>, vector<16x32xf32>
    %cst_8 = arith.constant dense<0.000000e+00> : vector<16x128xf32>
    %9 = tpu.matmul %8, %7, %cst_8 {dimension_numbers = #tpu.dot_dimension_numbers<[1], [0], [0], [1], [0, 0, 1, 1], [], []>} : vector<16x32xf32>, vector<32x128xf32>, vector<16x128xf32> -> vector<16x128xf32>
    %c0_9 = arith.constant 0 : index
    %c0_10 = arith.constant 0 : index
    %10 = vector.load %arg5[%c0_9, %c0_10] : memref<16x1xf32, #tpu.memory_space<vmem>>, vector<16x1xf32>
    %11 = vector.broadcast %10 : vector<16x1xf32> to vector<16x128xf32>
    %12 = arith.addf %9, %11 : vector<16x128xf32>
    %13 = vector.extract_strided_slice %12 {offsets = [0, 0], sizes = [8, 128], strides = [1, 1]} : vector<16x128xf32> to vector<8x128xf32>
    %c0_11 = arith.constant 0 : index
    %c0_12 = arith.constant 0 : index
    %14 = vector.load %arg6[%c0_11, %c0_12] : memref<8x128xf32, #tpu.memory_space<vmem>>, vector<8x128xf32>
    tpu.vector_store %arg6[%c0_11, %c0_12], %13 {strides = array<i32>} : memref<8x128xf32, #tpu.memory_space<vmem>>, vector<8x128xf32>,
    %15 = vector.extract_strided_slice %12 {offsets = [8, 0], sizes = [8, 128], strides = [1, 1]} : vector<16x128xf32> to vector<8x128xf32>
    %c0_13 = arith.constant 0 : index
    %c0_14 = arith.constant 0 : index
    %16 = vector.load %arg7[%c0_13, %c0_14] : memref<8x128xf32, #tpu.memory_space<vmem>>, vector<8x128xf32>
    tpu.vector_store %arg7[%c0_13, %c0_14], %15 {strides = array<i32>} : memref<8x128xf32, #tpu.memory_space<vmem>>, vector<8x128xf32>,
    return
  }
  func.func @transform_0(%arg0: i32) -> (i32, i32) {
    %c0_i32 = arith.constant 0 : i32
    %c0_i32_0 = arith.constant 0 : i32
    return %c0_i32, %arg0 : i32, i32
  }
  func.func @transform_1(%arg0: i32) -> (i32, i32) {
    %c0_i32 = arith.constant 0 : i32
    %c0_i32_0 = arith.constant 0 : i32
    %c0_i32_1 = arith.constant 0 : i32
    return %c0_i32, %c0_i32_0 : i32, i32
  }
  func.func @transform_2(%arg0: i32) -> (i32, i32) {
    %c0_i32 = arith.constant 0 : i32
    %c0_i32_0 = arith.constant 0 : i32
    %c0_i32_1 = arith.constant 0 : i32
    return %c0_i32, %c0_i32_0 : i32, i32
  }
  func.func @transform_3(%arg0: i32) -> (i32, i32) {
    %c0_i32 = arith.constant 0 : i32
    %c0_i32_0 = arith.constant 0 : i32
    %c0_i32_1 = arith.constant 0 : i32
    return %c0_i32, %c0_i32_0 : i32, i32
  }
  func.func @transform_4(%arg0: i32) -> (i32, i32) {
    %c0_i32 = arith.constant 0 : i32
    %c0_i32_0 = arith.constant 0 : i32
    %c0_i32_1 = arith.constant 0 : i32
    return %c0_i32, %c0_i32_0 : i32, i32
  }
  func.func @transform_5(%arg0: i32) -> (i32, i32) {
    %c0_i32 = arith.constant 0 : i32
    %c0_i32_0 = arith.constant 0 : i32
    return %c0_i32, %arg0 : i32, i32
  }
  func.func @transform_6(%arg0: i32) -> (i32, i32) {
    %c0_i32 = arith.constant 0 : i32
    %c0_i32_0 = arith.constant 0 : i32
    return %c0_i32, %arg0 : i32, i32
  }
}

</mosaic_0001>

<bundles_post_ra>
// kernel: tpu_custom_call.1
= control target key start
LH: loop header
LB: loop body
LE: loop exit
PB: predicated region body
PF: predicated region fallthrough
CT: control target
= control target key end

     0   :  { %12 = vsyncpa [#allocation4], 0  ;;  %s1083_s0 = inlined_call_operand.vmem [shape: f32[16,512], index: 0, kind: input, shape index: {}]   ;;  %s1084_s1 = inlined_call_operand.vmem [shape: f32[32,16], index: 1, kind: input, shape index: {}]   ;;  %s1085_s2 = inlined_call_operand.vmem [shape: f32[32,1], index: 2, kind: input, shape index: {}]   ;;  %s1086_s3 = inlined_call_operand.vmem [shape: f32[16,32], index: 3, kind: input, shape index: {}]   ;;  %s1087_s4 = inlined_call_operand.vmem [shape: f32[16,1], index: 4, kind: input, shape index: {}]   ;;  %s1088_s5 = inlined_call_operand.hbm [shape: f32[8,512], index: 5, kind: output, shape index: {0}]   ;;  %s1089_s6 = inlined_call_operand.hbm [shape: f32[8,512], index: 6, kind: output, shape index: {1}]  }
   0x1   :  { %14 = vsyncpa [#allocation4 + $0x1], 0 }
   0x2   :  { %15 = vsyncpa [#allocation6], 0 }
   0x3   :  { %17 = vsyncpa [#allocation6 + $0x1], 0  ;;  %s905_s21 = smov 0   ;;  %s907_s22 = smov 0  }
   0x4   :  { %s909_s23 = smov 0   ;;  %s911_s24 = smov 0  }
   0x5 LB: > { %s657_s25 = sadd.s32 4294967295, %s865_s24   ;;  %s658_s26 = sadd.s32 4294967294, %s865_s24   ;;  %s865_s24 = sphi %s911_s24, %s1095_s24   ;;  %s861_s23 = sphi %s909_s23, %s1094_s23   ;;  %s857_s22 = sphi %s907_s22, %s1093_s22   ;;  %s853_s21 = sphi %s905_s21, %s1092_s21  }
   0x6   : > { %s928_s27 = sadd.s32 1, %s865_s24   ;;  %s30_s28 = sadd.s32 1, %s861_s23 }
   0x7   : > { %s27_s29 = ssub.s32 %s865_s24, %s928_s27  ;;  %p37_p0 = scmp.ne.s32.totalorder %s861_s23, %s857_s22 }
   0x8   : > { %p28_p1 = scmp.eq.s32.totalorder %s27_s29, 0  ;;  %p38_p2 = scmp.eq.s32.totalorder %s865_s24, 0 }
   0x9   : > { %p151_p3 = scmp.eq.s32.totalorder %s657_s25, 3  ;;  %p156_p4 = scmp.ne.s32.totalorder %s857_s22, %s853_s21 }
   0xa   : > { %s941_s30 = scalar_select %p28_p1, %s861_s23, %s30_s28  }
   0xb   : > { %p39_p5 = por %p38_p2, %p37_p0  ;;  %p943_p6 = por %p151_p3, %p37_p0 }
   0xc   : > { %p157_p7 = scmp.eq.s32.totalorder %s658_s26, 3  ;;  %p660_p9 = scmp.ge.s32.totalorder %s865_s24, 4 }
   0xe   : > { %p947_p8 = por %p157_p7, %p156_p4  ;;  %211 = sbr.rel (%p660_p9) target bundleno = 28 (0x1c), region = 32 }
  0x15   : > { %214 = sbr.rel (!%p39_p5) target bundleno = 28 (0x1c), region = 36  ;;  %s216_s9 = sand.u32 (%p39_p5), 1, %s861_s23  }
  0x16   : > { %s662_s10 = sshll.u32 (%p39_p5), %s865_s24, 3  ;;  %s661_s11 = sshll.u32 (%p39_p5), %s216_s9, 4 }
  0x17   : > { %s220_s14 = scalar_lea.vmem (%p39_p5), %s1083_s0, %s662_s10  ;;  %s218_s15 = scalar_lea.vmem (%p39_p5), [#allocation2], %s661_s11 }
  0x18   : > { %v250_v0 = vld [vmem:[%s220_s14] sm:$0xff] (%p39_p5) }
  0x19   : > { %v252_v1 = vld [vmem:[%s220_s14 + $0x20] sm:$0xff] (%p39_p5)  ;;  %251 = vst [vmem:[%s218_s15] sm:$0xff] (%p39_p5), %v250_v0 }
  0x1a   : > { %253 = vst [vmem:[%s218_s15 + $0x8] sm:$0xff] (%p39_p5), %v252_v1 }
  0x1c PF: > { %p663_p10 = scmp.ge.s32.totalorder %s865_s24, 1  ;;  %p258_p11 = scmp.lt.s32.totalorder %s865_s24, 5 }
  0x1e   : > { %p259_p12 = pnand %p663_p10, %p258_p11 }
  0x1f   : > { %s960_s16 = sand.u32 (!%p259_p12), 1, %s857_s22   ;;  %v299_v2 = vld [vmem:[%s1084_s1] sm:$0xff] (!%p259_p12)  ;;  %vm329_vm0 = vcmask (!%p259_p12), 130048   ;;  %v867_v3 = vmov (!%p259_p12), 0   ;;  %v307_v5 = vld [vmem:[%s1085_s2 + $0x10] sm:$0xff] (!%p259_p12)  ;;  %v306_v8 = vld [vmem:[%s1085_s2 + $0x8] sm:$0xff] (!%p259_p12) }
  0x20   : > { %262 = sbr.rel (%p259_p12) target bundleno = 520 (0x208), region = 74  ;;  %s664_s19 = sshll.u32 (!%p259_p12), %s960_s16, 4  ;;  %695 = vmatprep.mubr.msk.f32.mxu0 (!%p259_p12), %vm329_vm0, %v299_v2  ;;  %769 = vset.pattern.permute.xlu0 (!%p259_p12), %v867_v3  ;;  %v305_v4 = vld [vmem:[%s1085_s2] sm:$0xff] (!%p259_p12)  ;;  %v308_v10 = vld [vmem:[%s1085_s2 + $0x18] sm:$0xff] (!%p259_p12)  ;;  %v300_v11 = vld [vmem:[%s1084_s1 + $0x8] sm:$0xff] (!%p259_p12)  ;;  %vm445_vm1 = vcmask (!%p259_p12), 261120  }
  0x21   : > { %311 = vperm.xlu0 (!%p259_p12), %769, %v305_v4   ;;  %770 = vset.pattern.permute.xlu1 (!%p259_p12), %v867_v3  ;;  %s267_s9 = scalar_lea.vmem (!%p259_p12), [#allocation2], %s664_s19  ;;  %v433_v12 = vld [vmem:[%s1087_s4] sm:$0xff] (!%p259_p12)  ;;  %v301_v13 = vld [vmem:[%s1084_s1 + $0x10] sm:$0xff] (!%p259_p12)  ;;  %v434_v14 = vld [vmem:[%s1087_s4 + $0x8] sm:$0xff] (!%p259_p12)  ;;  %s665_s14 = sshll.u32 (!%p259_p12), %s960_s16, 3 }
  0x22   : > { %v303_v6 = vld [vmem:[%s267_s9] sm:$0xff] (!%p259_p12)  ;;  %v304_v7 = vld [vmem:[%s267_s9 + $0x8] sm:$0xff] (!%p259_p12)  ;;  %321 = vperm.xlu1 (!%p259_p12), %770, %v307_v5   ;;  %s675_s15 = sshll.u32 (!%p259_p12), %s657_s25, 7  ;;  %s298_s17 = scalar_lea.vmem (!%p259_p12), [#allocation5], %s665_s14 }
  0x23   : > { %v712_v9 = vpack.c.bf16 (!%p259_p12), %v304_v7, %v303_v6  ;;  %v302_v15 = vld [vmem:[%s1084_s1 + $0x18] sm:$0xff] (!%p259_p12)  ;;  %v431_v16 = vld [vmem:[%s1086_s3] sm:$0xff] (!%p259_p12)  ;;  %v432_v35 = vld [vmem:[%s1086_s3 + $0x8] sm:$0xff] (!%p259_p12)  ;;  %s561_s18 = sshll.u32 (!%p259_p12), %s298_s17, 4  ;;  %s291_s19 = scalar_lea.vmem (!%p259_p12), [#allocation3], %s665_s14  ;;  %s1013_s18 = int_to_ptr.vmem [resolvable:$true] %s561_s18 }
  0x24   : > { %709 = vmatprep.mubr.msk.f32.mxu1 (!%p259_p12), %vm445_vm1, %v431_v16  ;;  %s548_s20 = sshll.u32 (!%p259_p12), %s291_s19, 4  ;;  %s1011_s29 = scalar_lea.hbm (!%p259_p12), %s1089_s6, %s675_s15  ;;  %s1020_s20 = int_to_ptr.vmem [resolvable:$true] %s548_s20 }
  0x25   : > { %713 = vmatprep.subr.bf16.mxu0 (!%p259_p12), %v712_v9  ;;  %316 = vperm.xlu0 (!%p259_p12), %769, %v306_v8   ;;  %s1018_s10 = scalar_lea.hbm (!%p259_p12), %s1088_s5, %s675_s15  ;;  %s535_s11 = scalar_lea.sflag (!%p259_p12), [#allocation6], %s960_s16 }
  0x26   : > { %715 = vmatpush3.bf16.msra.mxu0 (!%p259_p12), %v712_v9  ;;  %326 = vperm.xlu1 (!%p259_p12), %770, %v308_v10   ;;  %s771_s12 = scalar_lea.vmem (!%p259_p12), %s1013_s18, 128  ;;  %s868_s13 = smov (!%p259_p12), [#allocation5]  }
  0x27   : > { %p772_p13 = scmp.ne.s32.totalorder %s1013_s18, %s771_s12  ;;  %s775_s14 = sshll.u32 %s868_s13, 4  ;;  %s776_s14 = int_to_ptr.vmem [resolvable:$false] %s775_s14 }
  0x28   : > { %s777_s26 = scalar_lea.vmem %s776_s14, 256  ;;  %p778_p2 = scmp.lt.s32.totalorder %s1013_s18, %s776_s14 }
  0x29   : > { %696 = vmatmul.mubr.msk.f32.vlgmr.msra.gmra.mrb[0].mxu0 %vm329_vm0, %v300_v11  ;;  %437 = vperm.xlu0 %769, %v433_v12   ;;  %p773_p0 = pnand %p772_p13, %p943_p6  ;;  %p779_p3 = scmp.lt.s32.totalorder %s777_s26, %s771_s12 }
  0x2a   : > { %698 = vmatprep.mubr.msk.f32.mxu0 %vm329_vm0, %v301_v13  ;;  %442 = vperm.xlu1 %770, %v434_v14  }
  0x2b   : > { %p774_p1 = pneg %p773_p0  ;;  %p780_p4 = por %p779_p3, %p778_p2 }
  0x2d   : > { %699 = vmatmul.mubr.msk.f32.gmra.mrb[2].mxu0 %vm329_vm0, %v302_v15  ;;  %p781_p5 = pnand %p780_p4, %p774_p1 }
  0xa0   : > { %v312_v17 = vpop.permute.xlu0 %311 }
  0xa1   : > { %v322_v18 = vpop.permute.xlu1 %321 }
  0xa4   : > { %v317_v19 = vpop.permute.xlu0 %316 }
  0xa5   : > { %v327_v25 = vpop.permute.xlu1 %326 }
  0xa8   : > { %v438_v38 = vpop.permute.xlu0 %437 }
  0xa9   : > { %v443_v36 = vpop.permute.xlu1 %442 }
  0xfc   : > { %v697_v20 = vpop.f32.mrb[0].mxu0 }
  0xfd   : > { %v414_v21 = vadd.f32 %v697_v20, %v317_v19  ;;  %v408_v22 = vpop.f32.mrb[1].mxu0 }
  0xfe   : > { %v409_v23 = vadd.f32 %v408_v22, %v312_v17 }
  0xff   : > { %v428_v24 = vmax.f32 %v414_v21, 0.0 }
 0x100   : > { %v427_v26 = vmax.f32 %v409_v23, 0.0  ;;  %v700_v27 = vpop.f32.mrb[2].mxu0 }
 0x101   : > { %v424_v28 = vadd.f32 %v700_v27, %v327_v25  ;;  %v418_v29 = vpop.f32.mrb[3].mxu0 }
 0x102   : > { %v419_v30 = vadd.f32 %v418_v29, %v322_v18  ;;  %v716_v31 = vpack.c.bf16 %v428_v24, %v427_v26 }
 0x103   : > { %v430_v32 = vmax.f32 %v424_v28, 0.0 }
 0x104   : > { %v429_v33 = vmax.f32 %v419_v30, 0.0  ;;  %717 = vmatprep.subr.bf16.mxu1 %v716_v31 }
 0x105   : > { %719 = vmatpush3.bf16.msra.mxu1 %v716_v31 }
 0x106   : > { %v720_v34 = vpack.c.bf16 %v430_v32, %v429_v33 }
 0x108   : > { %721 = vmatprep.subr.bf16.mxu1 %v720_v34 }
 0x109   : > { %723 = vmatpush3.bf16.msra.mxu1 %v720_v34 }
 0x10c   : > { %710 = vmatmul.mubr.msk.f32.vlgmr.msra.gmra.mrb[0].mxu1 %vm445_vm1, %v432_v35 }
 0x1df   : > { %v711_v37 = vpop.f32.mrb[0].mxu1 }
 0x1e0   : > { %v524_v39 = vadd.f32 %v711_v37, %v443_v36  ;;  %v518_v40 = vpop.f32.mrb[1].mxu1 }
 0x1e1   : > { %v519_v41 = vadd.f32 %v518_v40, %v438_v38 }
 0x1e2   : > { %528 = vst [vmem:[%s298_s17] sm:$0xff] %v524_v39 }
 0x1e3   : > { %527 = vst [vmem:[%s291_s19] sm:$0xff] %v519_v41 }
 0x1e4   : > { %784 = shalt.err (!%p781_p5)
}
 0x1e5   : > { %s785_s15 = scalar_lea.hbm %s1011_s29, 128  ;;  %s789_s28 = scalar_lea.hbm %s1089_s6, 512 }
 0x1e6   : > { %p786_p7 = scmp.ne.s32.totalorder %s1011_s29, %s785_s15  ;;  %p790_p11 = scmp.lt.u32.totalorder %s1011_s29, %s1089_s6 }
 0x1e7   : > { %p791_p12 = scmp.lt.u32.totalorder %s789_s28, %s785_s15  ;;  %p793_p0 = scmp.lt.u32.totalorder %s785_s15, %s1011_s29 }
 0x1e8   : > { %p787_p9 = pnand %p786_p7, %p943_p6 }
 0x1e9   : > { %p792_p13 = por %p791_p12, %p790_p11 }
 0x1ea   : > { %p788_p10 = pneg %p787_p9 }
 0x1eb   : > { %p794_p1 = por %p793_p0, %p792_p13 }
 0x1ed   : > { %p795_p2 = pnand %p794_p1, %p788_p10 }
 0x1ef   : > { %798 = shalt.err (!%p795_p2)
}
 0x1f0   : > { %725 = dma.vmem_to_hbm [thread:$0]  (%p943_p6), %s1013_s18, 128, %s1011_s29, %s535_s11  }
 0x1f1   : > { %s530_s12 = scalar_lea.sflag [#allocation4], %s960_s16  ;;  %s799_s13 = scalar_lea.vmem %s1020_s20, 128 }
 0x1f2   : > { %p800_p3 = scmp.ne.s32.totalorder %s1020_s20, %s799_s13  ;;  %s869_s14 = smov [#allocation3]  }
 0x1f3   : > { %s803_s26 = sshll.u32 %s869_s14, 4  ;;  %s804_s26 = int_to_ptr.vmem [resolvable:$false] %s803_s26 }
 0x1f4   : > { %p801_p4 = pnand %p800_p3, %p943_p6  ;;  %s805_s15 = scalar_lea.vmem %s804_s26, 256 }
 0x1f5   : > { %p806_p7 = scmp.lt.s32.totalorder %s1020_s20, %s804_s26  ;;  %p807_p9 = scmp.lt.s32.totalorder %s805_s15, %s799_s13 }
 0x1f6   : > { %p802_p5 = pneg %p801_p4 }
 0x1f7   : > { %p808_p10 = por %p807_p9, %p806_p7 }
 0x1f9   : > { %p809_p11 = pnand %p808_p10, %p802_p5 }
 0x1fb   : > { %812 = shalt.err (!%p809_p11)
}
 0x1fc   : > { %s813_s16 = scalar_lea.hbm %s1018_s10, 128  ;;  %s817_s11 = scalar_lea.hbm %s1088_s5, 512 }
 0x1fd   : > { %p814_p12 = scmp.ne.s32.totalorder %s1018_s10, %s813_s16  ;;  %p818_p1 = scmp.lt.u32.totalorder %s1018_s10, %s1088_s5 }
 0x1fe   : > { %p819_p2 = scmp.lt.u32.totalorder %s817_s11, %s813_s16  ;;  %p821_p4 = scmp.lt.u32.totalorder %s813_s16, %s1018_s10 }
 0x1ff   : > { %p815_p13 = pnand %p814_p12, %p943_p6 }
 0x200   : > { %p820_p3 = por %p819_p2, %p818_p1 }
 0x201   : > { %p816_p0 = pneg %p815_p13 }
 0x202   : > { %p822_p5 = por %p821_p4, %p820_p3 }
 0x204   : > { %p823_p7 = pnand %p822_p5, %p816_p0 }
 0x206   : > { %826 = shalt.err (!%p823_p7)
}
 0x207   : > { %724 = dma.vmem_to_hbm [thread:$0]  (%p943_p6), %s1020_s20, 128, %s1018_s10, %s530_s12  }
 0x208 PF: > { %p735_p9 = scmp.ge.s32.totalorder %s865_s24, 2  ;;  %s573_s28 = sand.u32 1, %s853_s21  }
 0x209   : > { %s574_s25 = scalar_lea.sflag [#allocation4], %s573_s28 }
 0x20a   : > { %p729_p10 = pnand %p735_p9, %p947_p8 }
 0x20c   : > { %844 = dma.done.wait (!%p729_p10), %s574_s25, 128  }
 0x20d   : > { %846 = vsyncadd (!%p729_p10), %s574_s25, 4294967168  ;;  %s583_s9 = scalar_lea.sflag [#allocation6], %s573_s28 }
 0x20e   : > { %848 = dma.done.wait (!%p729_p10), %s583_s9, 128  }
 0x20f   : > { %850 = vsyncadd (!%p729_p10), %s583_s9, 4294967168  ;;  %p20_p6 = scmp.ge.s32.totalorder %s928_s27, 6   ;;  %s1092_s21 = smov %s857_s22 }
 0x210   : > { %s1093_s22 = smov %s861_s23  ;;  %s1094_s23 = smov %s941_s30 }
 0x211   : > { %s1095_s24 = smov %s928_s27  ;;  %22 = sbr.rel (!%p20_p6) target bundleno = 5 (0x5), region = 135 }
 0x218   :  { %588 = vsyncpa [#allocation4], 1 }
 0x219   :  { %590 = vsyncpa [#allocation4 + $0x1], 1 }
 0x21a   :  { %591 = vsyncpa [#allocation6], 1 }
 0x21b   :  { %593 = vsyncpa [#allocation6 + $0x1], 1 }

</bundles_post_ra>
